<compile_context>
chip_gen: v6e
topology: v6e:2x2x1
jax: 0.10.0
libtpu: 0.0.40
codegen_flags: <defaults>
</compile_context>

<pallas_src>
import functools
import math

import jax
import jax.numpy as jnp
from jax.experimental import pallas as pl
from jax.experimental.pallas import tpu as pltpu


_VMEM_BUDGET = 40 * 1024 * 1024   # per-step tile footprint budget (v7x-safe)
_VMEM_LIMIT = 48 * 1024 * 1024    # scoped VMEM limit passed to Mosaic


def _round_up(x: int, m: int) -> int:
    return (x + m - 1) // m * m


def _cdiv(a: int, b: int) -> int:
    return (a + b - 1) // b


# ----------------------------- kernels --------------------------------------


def _linear_kernel_single_k(x_ref, w_ref, b_ref, o_ref):
    # x_ref: (tm, K)  w_ref: (K, tn)  b_ref: (1, tn)  o_ref: (tm, tn)
    # Whole reduction in one MXU pass, f32 accumulation, f32 bias add, cast.
    acc = jnp.dot(x_ref[...], w_ref[...], preferred_element_type=jnp.float32)
    o_ref[...] = (acc + b_ref[...].astype(jnp.float32)).astype(o_ref.dtype)


def _linear_kernel_multi_k(x_ref, w_ref, b_ref, o_ref, acc_ref):
    # Fallback for very large K: k is the innermost ("arbitrary") grid axis,
    # acc_ref is a resident f32 scratch tile.
    k = pl.program_id(2)

    @pl.when(k == 0)
    def _():
        acc_ref[...] = jnp.zeros_like(acc_ref)

    acc_ref[...] += jnp.dot(
        x_ref[...], w_ref[...], preferred_element_type=jnp.float32
    )

    @pl.when(k == pl.num_programs(2) - 1)
    def _():
        o_ref[...] = (acc_ref[...] + b_ref[...].astype(jnp.float32)).astype(
            o_ref.dtype
        )


# --------------------------- tile selection ----------------------------------


def _footprint(tm, tn, tk, in_bytes, out_bytes, with_acc):
    # Double-buffered x, w, bias, out tiles (+ optional f32 accumulator).
    f = 2 * tm * tk * in_bytes
    f += 2 * tk * tn * in_bytes
    f += 2 * tm * tn * out_bytes
    f += 2 * tn * 4
    if with_acc:
        f += tm * tn * 4
    return f


def _choose_tm(M, tn, tk, in_bytes, out_bytes, with_acc, budget):
    if M <= 512:
        tm = M  # full-dim block: no (8,) alignment needed, grid m = 1
    else:
        # Large M: keep m-grid extent >= 2 so both v7x TensorCores get work,
        # cap at 1024 to amortize per-step overhead.
        tm = min(1024, _round_up(_cdiv(M, 2), 8))
    while tm > 8 and _footprint(tm, tn, tk, in_bytes, out_bytes, with_acc) > budget:
        tm = max(8, _round_up(tm // 2, 8))
    return tm


# ------------------------------ wrapper --------------------------------------


@functools.partial(jax.jit, static_argnames=("compute_dtype",))
def linear_projection_kt(x, w_kt, bias, *, compute_dtype=jnp.bfloat16):
    """y = x @ w_kt + bias, with w_kt already in (patch_dim, vec_length) layout.

    x:    (..., patch_dim)
    w_kt: (patch_dim, vec_length)   -- pre-transposed nn.Linear weight
    bias: (vec_length,)
    returns (..., vec_length), same dtype as x.
    """
    K = x.shape[-1]
    leading = x.shape[:-1]
    Kw, V = w_kt.shape
    assert Kw == K and bias.shape == (V,)

    out_dtype = x.dtype
    M = int(math.prod(leading)) if leading else 1
    x2d = x.reshape(M, K)

    in_dt = compute_dtype if compute_dtype is not None else x.dtype
    xc = x2d.astype(in_dt)           # MXU-native bf16 inputs
    wc = w_kt.astype(in_dt)
    b2d = bias.reshape(1, V).astype(jnp.float32)

    in_bytes = jnp.dtype(in_dt).itemsize
    out_bytes = jnp.dtype(out_dtype).itemsize
    budget = _VMEM_BUDGET

    single_k = True
    k_grid = 1
    tk = K

    if _footprint(128, V, K, in_bytes, out_bytes, False) <= budget:
        # Path A (typical ViT): single K block, single N block.  Weight+bias
        # resident in VMEM; x streamed from HBM exactly once; no padding.
        tn = V
        tm = _choose_tm(M, tn, tk, in_bytes, out_bytes, False, budget)
    elif V > 512 and _footprint(128, 512, K, in_bytes, out_bytes, False) <= budget:
        # Path B: single K block, tile N (only for very large vec_length).
        tn = 512
        tm = _choose_tm(M, tn, tk, in_bytes, out_bytes, False, budget)
    else:
        # Path C: very large K -> tile K with an f32 accumulator.  Requires the
        # K axis of x/w to be padded to a tk multiple (zero padding is exact).
        single_k = False
        tn = V if V <= 512 else 512
        tk = 512
        while tk > 128 and _footprint(128, tn, tk, in_bytes, out_bytes, True) > budget:
            tk //= 2
        tm = _choose_tm(M, tn, tk, in_bytes, out_bytes, True, budget)
        K_pad = _round_up(K, tk)
        xc = jnp.pad(xc, ((0, 0), (0, K_pad - K)))
        wc = jnp.pad(wc, ((0, K_pad - K), (0, 0)))
        k_grid = K_pad // tk

    n_grid = _cdiv(V, tn)
    m_grid = _cdiv(M, tm)

    if single_k:
        grid = (n_grid, m_grid)
        kernel = _linear_kernel_single_k
        in_specs = [
            pl.BlockSpec((tm, tk), lambda n, m: (m, 0)),   # x: depends on m only
            pl.BlockSpec((tk, tn), lambda n, m: (0, n)),   # w: depends on n only
            pl.BlockSpec((1, tn), lambda n, m: (0, n)),    # bias
        ]
        out_spec = pl.BlockSpec((tm, tn), lambda n, m: (m, n))
        scratch = []
        dims = ("parallel", "parallel")
    else:
        grid = (n_grid, m_grid, k_grid)  # k innermost reduction
        kernel = _linear_kernel_multi_k
        in_specs = [
            pl.BlockSpec((tm, tk), lambda n, m, k: (m, k)),
            pl.BlockSpec((tk, tn), lambda n, m, k: (k, n)),
            pl.BlockSpec((1, tn), lambda n, m, k: (0, n)),
        ]
        out_spec = pl.BlockSpec((tm, tn), lambda n, m, k: (m, n))
        scratch = [pltpu.VMEM((tm, tn), jnp.float32)]
        dims = ("parallel", "parallel", "arbitrary")

    out = pl.pallas_call(
        kernel,
        out_shape=jax.ShapeDtypeStruct((M, V), out_dtype),
        grid_spec=pltpu.PrefetchScalarGridSpec(
            num_scalar_prefetch=0,
            grid=grid,
            in_specs=in_specs,
            out_specs=out_spec,
            scratch_shapes=scratch,
        ),
        compiler_params=pltpu.CompilerParams(
            dimension_semantics=dims,
            vmem_limit_bytes=_VMEM_LIMIT,
        ),
    )(xc, wc, b2d)

    return out.reshape(*leading, V)


def linear_projection(x, weight, bias, **kwargs):
    """Exact nn.Linear forward from PyTorch parameter layout.

    weight: (vec_length, patch_dim).  In a real model, store the weight
    pre-transposed and call linear_projection_kt directly so no per-forward
    transpose is materialized.
    """
    return linear_projection_kt(x, weight.T, bias, **kwargs)


if __name__ == "__main__":
    # Small ViT-ish demo shapes: batch=2, num_patches=8, patch_dim=32, vec_length=64
    batch, num_patches, patch_dim, vec_length = 2, 8, 32, 64

    key = jax.random.PRNGKey(0)
    kx, kw, kb = jax.random.split(key, 3)

    x = jax.random.normal(kx, (batch, num_patches, patch_dim), dtype=jnp.float32)
    bound = 1.0 / (patch_dim ** 0.5)
    weight = jax.random.uniform(
        kw, (vec_length, patch_dim), minval=-bound, maxval=bound, dtype=jnp.float32
    )
    bias = jax.random.uniform(
        kb, (vec_length,), minval=-bound, maxval=bound, dtype=jnp.float32
    )

    y = linear_projection(x, weight, bias)
    y = jax.block_until_ready(y)
    assert y.shape == (batch, num_patches, vec_length)

    # Reference: same math with the bf16 input rounding the kernel applies
    # (accumulation and bias add are f32 in both).
    xb = x.astype(jnp.bfloat16).astype(jnp.float32)
    wb = weight.astype(jnp.bfloat16).astype(jnp.float32)
    y_ref = xb @ wb.T + bias
    assert jnp.allclose(y, y_ref, atol=1e-3, rtol=1e-3)

    # Second check: exercises a multi-tile M grid with a partial last block.
    b2, p2, k2, v2 = 2, 601, 384, 256
    k2x, k2w, k2b = jax.random.split(jax.random.PRNGKey(1), 3)
    x2 = jax.random.normal(k2x, (b2, p2, k2), dtype=jnp.float32)
    bound2 = 1.0 / (k2 ** 0.5)
    w2 = jax.random.uniform(k2w, (v2, k2), minval=-bound2, maxval=bound2,
                            dtype=jnp.float32)
    bb2 = jax.random.uniform(k2b, (v2,), minval=-bound2, maxval=bound2,
                             dtype=jnp.float32)
    y2 = jax.block_until_ready(linear_projection(x2, w2, bb2))
    y2_ref = (x2.astype(jnp.bfloat16).astype(jnp.float32)
              @ w2.astype(jnp.bfloat16).astype(jnp.float32).T + bb2)
    assert y2.shape == (b2, p2, v2)
    assert jnp.allclose(y2, y2_ref, atol=1e-3, rtol=1e-3)

    print("KERNEL_OK")
</pallas_src>

<mosaic_0001>
module attributes {stable_mosaic.version = 11 : i64} {
  func.func @_linear_kernel_single_k(%arg0: i32, %arg1: i32, %arg2: memref<16x32xbf16, #tpu.memory_space<vmem>>, %arg3: memref<32x64xbf16, #tpu.memory_space<vmem>>, %arg4: memref<1x64xf32, #tpu.memory_space<vmem>>, %arg5: memref<16x64xf32, #tpu.memory_space<vmem>>) attributes {dimension_semantics = [#tpu.dimension_semantics<parallel>, #tpu.dimension_semantics<parallel>], iteration_bounds = array<i64: 1, 1>, scalar_prefetch = 0 : i64, scratch_operands = 0 : i64, tpu.core_type = #tpu.core_type<tc>, window_params = [{transform_indices = @transform_0, window_bounds = array<i64: 16, 32>}, {transform_indices = @transform_1, window_bounds = array<i64: 32, 64>}, {transform_indices = @transform_2, window_bounds = array<i64: 1, 64>}, {transform_indices = @transform_3, window_bounds = array<i64: 16, 64>}]} {
    %c0 = arith.constant 0 : index
    %c0_0 = arith.constant 0 : index
    %0 = vector.load %arg2[%c0, %c0_0] : memref<16x32xbf16, #tpu.memory_space<vmem>>, vector<16x32xbf16>
    %c0_1 = arith.constant 0 : index
    %c0_2 = arith.constant 0 : index
    %1 = vector.load %arg3[%c0_1, %c0_2] : memref<32x64xbf16, #tpu.memory_space<vmem>>, vector<32x64xbf16>
    %cst = arith.constant dense<0.000000e+00> : vector<16x64xf32>
    %2 = tpu.matmul %0, %1, %cst {dimension_numbers = #tpu.dot_dimension_numbers<[1], [0], [0], [1], [0, 0, 1, 1], [], []>} : vector<16x32xbf16>, vector<32x64xbf16>, vector<16x64xf32> -> vector<16x64xf32>
    %c0_3 = arith.constant 0 : index
    %c0_4 = arith.constant 0 : index
    %3 = vector.load %arg4[%c0_3, %c0_4] : memref<1x64xf32, #tpu.memory_space<vmem>>, vector<1x64xf32>
    %4 = vector.broadcast %3 : vector<1x64xf32> to vector<16x64xf32>
    %5 = arith.addf %2, %4 : vector<16x64xf32>
    %c0_5 = arith.constant 0 : index
    %c0_6 = arith.constant 0 : index
    %6 = vector.load %arg5[%c0_5, %c0_6] : memref<16x64xf32, #tpu.memory_space<vmem>>, vector<16x64xf32>
    tpu.vector_store %arg5[%c0_5, %c0_6], %5 {strides = array<i32>} : memref<16x64xf32, #tpu.memory_space<vmem>>, vector<16x64xf32>,
    return
  }
  func.func @transform_0(%arg0: i32, %arg1: i32) -> (i32, i32) {
    %c0_i32 = arith.constant 0 : i32
    %c0_i32_0 = arith.constant 0 : i32
    return %arg1, %c0_i32 : i32, i32
  }
  func.func @transform_1(%arg0: i32, %arg1: i32) -> (i32, i32) {
    %c0_i32 = arith.constant 0 : i32
    %c0_i32_0 = arith.constant 0 : i32
    return %c0_i32, %arg0 : i32, i32
  }
  func.func @transform_2(%arg0: i32, %arg1: i32) -> (i32, i32) {
    %c0_i32 = arith.constant 0 : i32
    %c0_i32_0 = arith.constant 0 : i32
    return %c0_i32, %arg0 : i32, i32
  }
  func.func @transform_3(%arg0: i32, %arg1: i32) -> (i32, i32) {
    %c0_i32 = arith.constant 0 : i32
    return %arg1, %arg0 : i32, i32
  }
}

</mosaic_0001>

<bundles_post_ra>
// kernel: linear_projection_kt.1
= control target key start
LH: loop header
LB: loop body
LE: loop exit
PB: predicated region body
PF: predicated region fallthrough
CT: control target
= control target key end

     0   :  { %v156_v1 = vmov 0.0   ;;  %vm157_vm0 = vmmov 0   ;;  %s196_s0 = inlined_call_operand.vmem [shape: bf16[16,32], index: 0, kind: input, shape index: {}]   ;;  %s197_s1 = inlined_call_operand.vmem [shape: bf16[32,64], index: 1, kind: input, shape index: {}]   ;;  %s198_s2 = inlined_call_operand.vmem [shape: f32[1,64], index: 2, kind: input, shape index: {}]   ;;  %s199_s3 = inlined_call_operand.hbm [shape: f32[16,64], index: 3, kind: output, shape index: {}]  }
   0x1   :  { %v131_v0 = vld [vmem:[%s197_s1 + $0x8] sm:$0xff]   ;;  %118 = vmatprep.subr.bf16.mxu0 %v156_v1  ;;  %v132_v2 = vld [vmem:[%s197_s1] sm:$0xff]   ;;  %122 = vmatprep.mubr.msk.bf16.mxu0 %vm157_vm0, %v156_v1 }
   0x2   :  { %119 = vmatpush3.bf16.msra.mxu0 %v131_v0 }
   0x3   :  { %120 = vmatprep.subr.bf16.mxu0 %v156_v1 }
   0x4   :  { %8 = vsyncpa [#allocation3], 0  ;;  %v133_v3 = vld [vmem:[%s196_s0] sm:$0xff]   ;;  %vm46_vm1 = vcmask 261120   ;;  %vm91_vm2 = vcmask 523264   ;;  %s158_s20 = smov [#allocation2]  }
   0x5   :  { %v110_v4 = vld [vmem:[%s198_s2] ss:$0 sm:$0xff]  ;;  %s99_s1 = sshll.u32 %s158_s20, 4  ;;  %s100_s1 = int_to_ptr.vmem [resolvable:$true] %s99_s1 }
   0x6   :  { %121 = vmatpush3.bf16.msra.mxu0 %v132_v2  ;;  %s134_s0 = scalar_lea.vmem %s100_s1, 256  ;;  %p139_p1 = scmp.lt.s32.totalorder %s100_s1, %s100_s1 }
   0x7   :  { %p135_p0 = scmp.ne.s32.totalorder %s100_s1, %s134_s0  ;;  %p140_p2 = scmp.lt.s32.totalorder %s134_s0, %s134_s0 }
   0x9   :  { %123 = vmatmul.mubr.msk.bf16.vlgmr.msra.gmra.mxu0 %vm46_vm1, %v133_v3  ;;  %p141_p3 = por %p140_p2, %p139_p1 }
   0xb   :  { %p142_p4 = pnand %p141_p3, %p135_p0 }
  0xc9   :  { %v84_v5 = vpop.f32.mrf.mxu0 }
  0xca   :  { %v85_v6 = vadd.f32 %v110_v4, %v84_v5 }
  0xcb   :  { %v124_v7 = vpop.f32.mrf.mxu0 }
  0xcc   :  { %92 = vst.msk [vmem:[#allocation2] sm:$0xff] %vm91_vm2, %v85_v6 }
  0xcd   :  { %v87_v8 = vpop.f32.mrf.mxu0 }
  0xce   :  { %v88_v9 = vadd.f32 %v110_v4, %v87_v8 }
  0xcf   :  { %v125_v10 = vpop.f32.mrf.mxu0 }
  0xd0   :  { %93 = vst.msk [vmem:[#allocation2 + $0x8] sm:$0xff] %vm91_vm2, %v88_v9 }
  0xd1   :  { %145 = shalt.err (!%p142_p4)
}
  0xd2   :  { %s159_s2 = smov 128   ;;  %s160_s21 = smov 8  }
  0xd3   :  { %105 = dma.vmem_to_hbm [thread:$0]  %s100_s1, 256, %s199_s3, [#allocation3], %s159_s2, %s159_s2, %s160_s21  }
  0xd4   :  { %154 = dma.done.wait [#allocation3], 256  }
  0xd5   :  { %155 = vsyncadd [#allocation3], 4294967040 }
  0xd6   :  { %109 = vsyncpa [#allocation3], 1 }

</bundles_post_ra>
